<compile_context>
chip_gen: v6e
topology: v6e:2x2x1
jax: 0.10.0
libtpu: 0.0.40
codegen_flags: <defaults>
</compile_context>

<pallas_src>
import functools
import math

import jax
import jax.numpy as jnp
from jax.experimental import pallas as pl
from jax.experimental.pallas import tpu as pltpu

# Large-but-finite additive-mask value: softmax of masked positions -> ~0, but a
# fully masked row can never become -inf / NaN (review correctness concern).
_NEG_LARGE = -1e30


def _erf(x):
    # Abramowitz & Stegun 7.1.26 rational approximation (max abs err ~1.5e-7):
    # matches nn.GELU()'s exact erf to ~fp32 precision.  Exact divide (no
    # approx reciprocal) per the correctness review.
    a1, a2, a3, a4, a5 = 0.254829592, -0.284496736, 1.421413741, -1.453152027, 1.061405429
    p = 0.3275911
    sgn = jnp.where(x >= 0.0, 1.0, -1.0)
    ax = jnp.abs(x)
    t = 1.0 / (1.0 + p * ax)
    poly = ((((a5 * t + a4) * t + a3) * t + a2) * t + a1) * t
    return sgn * (1.0 - poly * jnp.exp(-ax * ax))


def _gelu_exact(x):
    return 0.5 * x * (1.0 + _erf(x * (1.0 / math.sqrt(2.0))))


def _layer_norm(x, gamma, beta, eps=1e-5):
    mu = jnp.mean(x, axis=-1, keepdims=True)
    var = jnp.mean((x - mu) ** 2, axis=-1, keepdims=True)
    return (x - mu) * jax.lax.rsqrt(var + eps) * gamma + beta


# ----------------------------------------------------------------------------
# Kernel 1: attention core (per-head scores/softmax/context for one head group
# and one query row-tile).
# ----------------------------------------------------------------------------
def _attn_core_kernel(x_ref, mask_ref,
                      wq_ref, bq_ref, wk_ref, bk_ref, wv_ref, bv_ref,
                      attn_ref, ctx_ref, k_scr, v_scr,
                      *, heads_per_group, dk, tq):
    qi = pl.program_id(2)

    # K/V for this (batch, head-group): computed once (qi == 0) with a wide
    # (D, G*dk) MXU matmul, cached in bf16 VMEM scratch, reused by all q tiles.
    @pl.when(qi == 0)
    def _():
        xb = x_ref[...].astype(jnp.bfloat16)
        k = jnp.dot(xb, wk_ref[...], preferred_element_type=jnp.float32) + bk_ref[...]
        v = jnp.dot(xb, wv_ref[...], preferred_element_type=jnp.float32) + bv_ref[...]
        k_scr[...] = k.astype(jnp.bfloat16)
        v_scr[...] = v.astype(jnp.bfloat16)

    # Query rows for this tile come from the per-batch x block (single DMA of x).
    row0 = pl.multiple_of(qi * tq, tq)
    xq = x_ref[pl.ds(row0, tq), :].astype(jnp.bfloat16)               # (tq, D)
    # Group-wide Q projection; 1/sqrt(dk) already folded into wq/bq.
    q = jnp.dot(xq, wq_ref[...], preferred_element_type=jnp.float32) + bq_ref[...]
    q = q.astype(jnp.bfloat16)                                        # (tq, G*dk)
    add_mask = mask_ref[...].astype(jnp.float32)                      # (tq, S)

    # TODO(synk): for very large head groups a head sub-grid-axis would bound
    # live ranges better than this static unroll.
    ctx_parts = []
    for h in range(heads_per_group):                                  # static unroll
        sl = slice(h * dk, (h + 1) * dk)
        s = jax.lax.dot_general(q[:, sl], k_scr[:, sl],
                                (((1,), (1,)), ((), ())),
                                preferred_element_type=jnp.float32)   # (tq, S)
        s = s + add_mask
        m = jnp.max(s, axis=-1, keepdims=True)
        e = jnp.exp(s - m)
        w = e / jnp.sum(e, axis=-1, keepdims=True)      # exact normalize (sums to 1)
        attn_ref[h] = w.astype(attn_ref.dtype)
        ctx_parts.append(jnp.dot(w.astype(jnp.bfloat16), v_scr[:, sl],
                                 preferred_element_type=jnp.float32))
    # Single lane-dense store of the merged per-group context.
    ctx_ref[...] = jnp.concatenate(ctx_parts, axis=-1).astype(ctx_ref.dtype)


# ----------------------------------------------------------------------------
# Kernel 2: output projection + residual + LN1 + FFN (FF-chunked) + residual + LN2
# ----------------------------------------------------------------------------
def _proj_ffn_kernel(x_ref, ctx_ref, wo_ref, bo_ref, g1_ref, be1_ref,
                     w1_ref, b1_ref, w2_ref, b2_ref, g2_ref, be2_ref,
                     y_ref, x1_scr, acc_scr):
    fc = pl.program_id(2)

    @pl.when(fc == 0)
    def _():
        attn_out = jnp.dot(ctx_ref[...], wo_ref[...],
                           preferred_element_type=jnp.float32) + bo_ref[...]
        x1_scr[...] = _layer_norm(x_ref[...] + attn_out, g1_ref[...], be1_ref[...])
        acc_scr[...] = jnp.zeros_like(acc_scr)

    x1 = x1_scr[...]
    h1 = _gelu_exact(jnp.dot(x1.astype(jnp.bfloat16), w1_ref[...],
                             preferred_element_type=jnp.float32) + b1_ref[...])
    acc_scr[...] += jnp.dot(h1.astype(jnp.bfloat16), w2_ref[...],
                            preferred_element_type=jnp.float32)

    @pl.when(fc == pl.num_programs(2) - 1)
    def _():
        y_ref[...] = _layer_norm(x1_scr[...] + acc_scr[...] + b2_ref[...],
                                 g2_ref[...], be2_ref[...])


# ----------------------------------------------------------------------------
# Tiling helpers (per-chip-generation sizing).
# ----------------------------------------------------------------------------
def _tpu_vmem_capacity():
    try:
        cap = int(getattr(pltpu.get_tpu_info(), "vmem_capacity_bytes", 0))
        if cap > 0:
            return cap
    except Exception:
        pass
    return 64 * 1024 * 1024          # conservative (v7x-sized) fallback


def _pick_row_tile(n, cap):
    if n <= cap:
        return n
    for t in range(cap, 7, -1):
        if n % t == 0 and t % 8 == 0:
            return t
    return n


def _pick_ff_chunk(ff, cap):
    if ff <= cap:
        return ff
    for t in range(cap - cap % 128, 127, -128):
        if ff % t == 0:
            return t
    return ff


def _pick_head_group(num_heads, dk, d_model, lane_target=256):
    cands = [g for g in range(1, num_heads + 1)
             if num_heads % g == 0 and ((g * dk) % 128 == 0 or g * dk == d_model)]
    target = min(lane_target, d_model)
    for g in cands:
        if g * dk >= target:
            return g
    return cands[-1]


# ----------------------------------------------------------------------------
# Wrapper
# ----------------------------------------------------------------------------
def transformer_encoder_layer(x, mask, params, num_heads,
                              attn_weights_dtype=jnp.float32):
    B, S, D = x.shape
    dk = D // num_heads
    FF = params["w1"].shape[1]
    f32, bf16 = jnp.float32, jnp.bfloat16
    scale = 1.0 / math.sqrt(dk)

    # Per-generation VMEM budget / tile caps (v7x 64 MiB vs v5e/v6e 128 MiB).
    vmem_cap = _tpu_vmem_capacity()
    small_vmem = vmem_cap <= 80 * 1024 * 1024
    vmem_limit = int(min(vmem_cap * 3 // 4, 100 * 1024 * 1024))
    tq = _pick_row_tile(S, 128 if small_vmem else 256)      # attention q tile
    tq2 = _pick_row_tile(S, 256 if small_vmem else 512)     # FFN row tile
    tf = _pick_ff_chunk(FF, 512 if small_vmem else 2048)    # FF chunk
    G = _pick_head_group(num_heads, dk, D, lane_target=256)
    HG = num_heads // G
    Gdk = G * dk
    QT, QT2, FC = S // tq, S // tq2, FF // tf

    # Additive mask precomputed ONCE in the wrapper (bf16 halves DMA).
    # Matches `attn + (1-mask).masked_fill(..., finfo.min)` after softmax but
    # can never produce -inf / NaN rows.
    if mask is None:
        add_mask = jnp.zeros((B, S, S), bf16)
    else:
        m = jnp.broadcast_to(jnp.asarray(mask, f32), (B, 1, S, S))[:, 0]
        add_mask = jnp.where(m == 1.0, 0.0, _NEG_LARGE).astype(bf16)
    # TODO(synk): a per-head (B, H, S, S) mask would need a head-indexed mask spec.

    # bf16 MXU operands; 1/sqrt(dk) folded into the query projection.
    wq = (params["wq"] * scale).astype(bf16)
    bq = (params["bq"] * scale).astype(f32)
    wk = params["wk"].astype(bf16)
    wv = params["wv"].astype(bf16)
    wo = params["wo"].astype(bf16)
    w1 = params["w1"].astype(bf16)
    w2 = params["w2"].astype(bf16)
    # TODO(synk): int8 (v6e) / fp8 (v7x) weight quantization of w1/w2/wo.

    attn_kernel = functools.partial(_attn_core_kernel,
                                    heads_per_group=G, dk=dk, tq=tq)

    # NOTE: constant-index weight specs could use pipeline_mode=pl.Buffered(1)
    # to halve their VMEM; left at the default to stay conservative.
    attn, ctx = pl.pallas_call(
        attn_kernel,
        grid=(B, HG, QT),
        in_specs=[
            pl.BlockSpec((None, S, D), lambda b, g, qi: (b, 0, 0)),      # x
            pl.BlockSpec((None, tq, S), lambda b, g, qi: (b, qi, 0)),    # additive mask
            pl.BlockSpec((D, Gdk), lambda b, g, qi: (0, g)),             # wq (group cols)
            pl.BlockSpec((1, Gdk), lambda b, g, qi: (0, g)),             # bq
            pl.BlockSpec((D, Gdk), lambda b, g, qi: (0, g)),             # wk
            pl.BlockSpec((1, Gdk), lambda b, g, qi: (0, g)),             # bk
            pl.BlockSpec((D, Gdk), lambda b, g, qi: (0, g)),             # wv
            pl.BlockSpec((1, Gdk), lambda b, g, qi: (0, g)),             # bv
        ],
        out_specs=(
            pl.BlockSpec((None, G, tq, S), lambda b, g, qi: (b, g, qi, 0)),  # attn
            pl.BlockSpec((None, tq, Gdk), lambda b, g, qi: (b, qi, g)),      # ctx
        ),
        out_shape=(jax.ShapeDtypeStruct((B, num_heads, S, S), attn_weights_dtype),
                   jax.ShapeDtypeStruct((B, S, D), bf16)),
        scratch_shapes=[pltpu.VMEM((S, Gdk), bf16),     # K cache (group)
                        pltpu.VMEM((S, Gdk), bf16)],    # V cache (group)
        compiler_params=pltpu.CompilerParams(
            dimension_semantics=("parallel", "parallel", "arbitrary"),
            vmem_limit_bytes=vmem_limit),
    )(x, add_mask, wq, bq, wk, params["bk"].astype(f32), wv, params["bv"].astype(f32))

    y = pl.pallas_call(
        _proj_ffn_kernel,
        grid=(B, QT2, FC),
        in_specs=[
            pl.BlockSpec((None, tq2, D), lambda b, qi, fc: (b, qi, 0)),  # x (residual)
            pl.BlockSpec((None, tq2, D), lambda b, qi, fc: (b, qi, 0)),  # ctx
            pl.BlockSpec((D, D), lambda b, qi, fc: (0, 0)),              # wo
            pl.BlockSpec((1, D), lambda b, qi, fc: (0, 0)),              # bo
            pl.BlockSpec((1, D), lambda b, qi, fc: (0, 0)),              # ln1 gamma
            pl.BlockSpec((1, D), lambda b, qi, fc: (0, 0)),              # ln1 beta
            pl.BlockSpec((D, tf), lambda b, qi, fc: (0, fc)),            # w1 chunk
            pl.BlockSpec((1, tf), lambda b, qi, fc: (0, fc)),            # b1 chunk
            pl.BlockSpec((tf, D), lambda b, qi, fc: (fc, 0)),            # w2 chunk
            pl.BlockSpec((1, D), lambda b, qi, fc: (0, 0)),              # b2
            pl.BlockSpec((1, D), lambda b, qi, fc: (0, 0)),              # ln2 gamma
            pl.BlockSpec((1, D), lambda b, qi, fc: (0, 0)),              # ln2 beta
        ],
        out_specs=pl.BlockSpec((None, tq2, D), lambda b, qi, fc: (b, qi, 0)),
        out_shape=jax.ShapeDtypeStruct((B, S, D), f32),
        scratch_shapes=[pltpu.VMEM((tq2, D), f32),      # x1 = LN1(x + attn_out)
                        pltpu.VMEM((tq2, D), f32)],     # FFN accumulator
        compiler_params=pltpu.CompilerParams(
            dimension_semantics=("parallel", "parallel", "arbitrary"),
            vmem_limit_bytes=vmem_limit),
    )(x, ctx, wo, params["bo"].astype(f32),
      params["ln1_g"], params["ln1_b"],
      w1, params["b1"].astype(f32), w2, params["b2"].astype(f32),
      params["ln2_g"], params["ln2_b"])

    return y, attn


def init_params(key, d_model, dim_feedforward):
    ks = jax.random.split(key, 6)

    def lin(k, din, dout):
        kw, kb = jax.random.split(k)
        w = jax.random.normal(kw, (din, dout), jnp.float32) * 0.05   # (in, out)
        b = jax.random.normal(kb, (1, dout), jnp.float32) * 0.05
        return w, b

    wq, bq = lin(ks[0], d_model, d_model)
    wk, bk = lin(ks[1], d_model, d_model)
    wv, bv = lin(ks[2], d_model, d_model)
    wo, bo = lin(ks[3], d_model, d_model)
    w1, b1 = lin(ks[4], d_model, dim_feedforward)
    w2, b2 = lin(ks[5], dim_feedforward, d_model)
    return dict(
        wq=wq, bq=bq, wk=wk, bk=bk, wv=wv, bv=bv, wo=wo, bo=bo,
        w1=w1, b1=b1, w2=w2, b2=b2,
        ln1_g=jnp.ones((1, d_model), jnp.float32),   # PyTorch LayerNorm default init
        ln1_b=jnp.zeros((1, d_model), jnp.float32),
        ln2_g=jnp.ones((1, d_model), jnp.float32),
        ln2_b=jnp.zeros((1, d_model), jnp.float32),
    )


if __name__ == "__main__":
    B, S, D, H, FF = 2, 8, 32, 4, 64
    key = jax.random.PRNGKey(0)
    k_params, k_x = jax.random.split(key)

    params = init_params(k_params, D, FF)
    x = jax.random.normal(k_x, (B, S, D), jnp.float32)
    # causal 0/1 mask, broadcastable over heads like the PyTorch (B,1,S,S) usage
    mask = jnp.broadcast_to(jnp.tril(jnp.ones((S, S), jnp.float32)),
                            (B, 1, S, S))

    y, attn = transformer_encoder_layer(x, mask, params, num_heads=H)
    jax.block_until_ready((y, attn))
    assert y.shape == (B, S, D) and attn.shape == (B, H, S, S)
    assert bool(jnp.all(jnp.isfinite(y))) and bool(jnp.all(jnp.isfinite(attn)))
    # exact softmax normalize -> rows sum to 1
    assert bool(jnp.all(jnp.abs(jnp.sum(attn, axis=-1) - 1.0) < 1e-3))
    print("KERNEL_OK")
</pallas_src>

<mosaic_0001>
module attributes {stable_mosaic.version = 11 : i64} {
  func.func @_attn_core_kernel(%arg0: i32, %arg1: i32, %arg2: i32, %arg3: memref<1x8x32xf32, #tpu.memory_space<vmem>>, %arg4: memref<1x8x8xbf16, #tpu.memory_space<vmem>>, %arg5: memref<32x32xbf16, #tpu.memory_space<vmem>>, %arg6: memref<1x32xf32, #tpu.memory_space<vmem>>, %arg7: memref<32x32xbf16, #tpu.memory_space<vmem>>, %arg8: memref<1x32xf32, #tpu.memory_space<vmem>>, %arg9: memref<32x32xbf16, #tpu.memory_space<vmem>>, %arg10: memref<1x32xf32, #tpu.memory_space<vmem>>, %arg11: memref<1x4x8x8xf32, #tpu.memory_space<vmem>>, %arg12: memref<1x8x32xbf16, #tpu.memory_space<vmem>>, %arg13: memref<8x32xbf16, #tpu.memory_space<vmem>>, %arg14: memref<8x32xbf16, #tpu.memory_space<vmem>>) attributes {dimension_semantics = [#tpu.dimension_semantics<parallel>, #tpu.dimension_semantics<parallel>, #tpu.dimension_semantics<arbitrary>], iteration_bounds = array<i64: 2, 1, 1>, scalar_prefetch = 0 : i64, scratch_operands = 2 : i64, tpu.core_type = #tpu.core_type<tc>, window_params = [{transform_indices = @transform_0, window_bounds = array<i64: 1, 8, 32>}, {transform_indices = @transform_1, window_bounds = array<i64: 1, 8, 8>}, {transform_indices = @transform_2, window_bounds = array<i64: 32, 32>}, {transform_indices = @transform_3, window_bounds = array<i64: 1, 32>}, {transform_indices = @transform_4, window_bounds = array<i64: 32, 32>}, {transform_indices = @transform_5, window_bounds = array<i64: 1, 32>}, {transform_indices = @transform_6, window_bounds = array<i64: 32, 32>}, {transform_indices = @transform_7, window_bounds = array<i64: 1, 32>}, {transform_indices = @transform_8, window_bounds = array<i64: 1, 4, 8, 8>}, {transform_indices = @transform_9, window_bounds = array<i64: 1, 8, 32>}]} {
    %c0_i32 = arith.constant 0 : i32
    %0 = arith.cmpi eq, %arg2, %c0_i32 : i32
    %1 = arith.extui %0 : i1 to i32
    %c0_i32_0 = arith.constant 0 : i32
    %2 = arith.cmpi ne, %1, %c0_i32_0 : i32
    scf.if %2 {
      %c0_54 = arith.constant 0 : index
      %c0_55 = arith.constant 0 : index
      %c0_56 = arith.constant 0 : index
      %99 = vector.load %arg3[%c0_54, %c0_55, %c0_56] : memref<1x8x32xf32, #tpu.memory_space<vmem>>, vector<1x8x32xf32>
      %100 = vector.shape_cast %99 : vector<1x8x32xf32> to vector<8x32xf32>
      %101 = arith.truncf %100 : vector<8x32xf32> to vector<8x32xbf16>
      %c0_57 = arith.constant 0 : index
      %c0_58 = arith.constant 0 : index
      %102 = vector.load %arg7[%c0_57, %c0_58] : memref<32x32xbf16, #tpu.memory_space<vmem>>, vector<32x32xbf16>
      %cst_59 = arith.constant dense<0.000000e+00> : vector<8x32xf32>
      %103 = tpu.matmul %101, %102, %cst_59 {dimension_numbers = #tpu.dot_dimension_numbers<[1], [0], [0], [1], [0, 0, 1, 1], [], []>} : vector<8x32xbf16>, vector<32x32xbf16>, vector<8x32xf32> -> vector<8x32xf32>
      %c0_60 = arith.constant 0 : index
      %c0_61 = arith.constant 0 : index
      %104 = vector.load %arg8[%c0_60, %c0_61] : memref<1x32xf32, #tpu.memory_space<vmem>>, vector<1x32xf32>
      %105 = vector.broadcast %104 : vector<1x32xf32> to vector<8x32xf32>
      %106 = arith.addf %103, %105 : vector<8x32xf32>
      %c0_62 = arith.constant 0 : index
      %c0_63 = arith.constant 0 : index
      %107 = vector.load %arg9[%c0_62, %c0_63] : memref<32x32xbf16, #tpu.memory_space<vmem>>, vector<32x32xbf16>
      %cst_64 = arith.constant dense<0.000000e+00> : vector<8x32xf32>
      %108 = tpu.matmul %101, %107, %cst_64 {dimension_numbers = #tpu.dot_dimension_numbers<[1], [0], [0], [1], [0, 0, 1, 1], [], []>} : vector<8x32xbf16>, vector<32x32xbf16>, vector<8x32xf32> -> vector<8x32xf32>
      %c0_65 = arith.constant 0 : index
      %c0_66 = arith.constant 0 : index
      %109 = vector.load %arg10[%c0_65, %c0_66] : memref<1x32xf32, #tpu.memory_space<vmem>>, vector<1x32xf32>
      %110 = vector.broadcast %109 : vector<1x32xf32> to vector<8x32xf32>
      %111 = arith.addf %108, %110 : vector<8x32xf32>
      %112 = arith.truncf %106 : vector<8x32xf32> to vector<8x32xbf16>
      %c0_67 = arith.constant 0 : index
      %c0_68 = arith.constant 0 : index
      %113 = vector.load %arg13[%c0_67, %c0_68] : memref<8x32xbf16, #tpu.memory_space<vmem>>, vector<8x32xbf16>
      tpu.vector_store %arg13[%c0_67, %c0_68], %112 {strides = array<i32>} : memref<8x32xbf16, #tpu.memory_space<vmem>>, vector<8x32xbf16>,
      %114 = arith.truncf %111 : vector<8x32xf32> to vector<8x32xbf16>
      %c0_69 = arith.constant 0 : index
      %c0_70 = arith.constant 0 : index
      %115 = vector.load %arg14[%c0_69, %c0_70] : memref<8x32xbf16, #tpu.memory_space<vmem>>, vector<8x32xbf16>
      tpu.vector_store %arg14[%c0_69, %c0_70], %114 {strides = array<i32>} : memref<8x32xbf16, #tpu.memory_space<vmem>>, vector<8x32xbf16>,
    } else {
    }
    %c8_i32 = arith.constant 8 : i32
    %3 = arith.muli %arg2, %c8_i32 : i32
    %4 = tpu.assume_multiple %3, 8 : i32
    %c0 = arith.constant 0 : index
    %5 = arith.index_cast %4 : i32 to index
    %c0_1 = arith.constant 0 : index
    %6 = vector.load %arg3[%c0, %5, %c0_1] : memref<1x8x32xf32, #tpu.memory_space<vmem>>, vector<1x8x32xf32>
    %7 = vector.shape_cast %6 : vector<1x8x32xf32> to vector<8x32xf32>
    %8 = arith.truncf %7 : vector<8x32xf32> to vector<8x32xbf16>
    %c0_2 = arith.constant 0 : index
    %c0_3 = arith.constant 0 : index
    %9 = vector.load %arg5[%c0_2, %c0_3] : memref<32x32xbf16, #tpu.memory_space<vmem>>, vector<32x32xbf16>
    %cst = arith.constant dense<0.000000e+00> : vector<8x32xf32>
    %10 = tpu.matmul %8, %9, %cst {dimension_numbers = #tpu.dot_dimension_numbers<[1], [0], [0], [1], [0, 0, 1, 1], [], []>} : vector<8x32xbf16>, vector<32x32xbf16>, vector<8x32xf32> -> vector<8x32xf32>
    %c0_4 = arith.constant 0 : index
    %c0_5 = arith.constant 0 : index
    %11 = vector.load %arg6[%c0_4, %c0_5] : memref<1x32xf32, #tpu.memory_space<vmem>>, vector<1x32xf32>
    %12 = vector.broadcast %11 : vector<1x32xf32> to vector<8x32xf32>
    %13 = arith.addf %10, %12 : vector<8x32xf32>
    %14 = arith.truncf %13 : vector<8x32xf32> to vector<8x32xbf16>
    %c0_6 = arith.constant 0 : index
    %c0_7 = arith.constant 0 : index
    %c0_8 = arith.constant 0 : index
    %15 = vector.load %arg4[%c0_6, %c0_7, %c0_8] : memref<1x8x8xbf16, #tpu.memory_space<vmem>>, vector<1x8x8xbf16>
    %16 = vector.shape_cast %15 : vector<1x8x8xbf16> to vector<8x8xbf16>
    %17 = arith.extf %16 : vector<8x8xbf16> to vector<8x8xf32>
    %18 = vector.extract_strided_slice %14 {offsets = [0, 0], sizes = [8, 8], strides = [1, 1]} : vector<8x32xbf16> to vector<8x8xbf16>
    %c0_9 = arith.constant 0 : index
    %c0_10 = arith.constant 0 : index
    %19 = vector.load %arg13[%c0_9, %c0_10] : memref<8x32xbf16, #tpu.memory_space<vmem>>, vector<8x8xbf16>
    %cst_11 = arith.constant dense<0.000000e+00> : vector<8x8xf32>
    %20 = tpu.matmul %18, %19, %cst_11 {dimension_numbers = #tpu.dot_dimension_numbers<[1], [1], [0], [0], [0, 0, 1, 0], [], []>} : vector<8x8xbf16>, vector<8x8xbf16>, vector<8x8xf32> -> vector<8x8xf32>
    %21 = arith.addf %20, %17 : vector<8x8xf32>
    %cst_12 = arith.constant dense<0xFF800000> : vector<8xf32>
    %22 = vector.multi_reduction <maximumf>, %21, %cst_12 [1] : vector<8x8xf32> to vector<8xf32>
    %23 = vector.shape_cast %22 : vector<8xf32> to vector<8x1xf32>
    %24 = vector.broadcast %23 : vector<8x1xf32> to vector<8x8xf32>
    %25 = arith.subf %21, %24 : vector<8x8xf32>
    %26 = math.exp %25 : vector<8x8xf32>
    %cst_13 = arith.constant dense<0.000000e+00> : vector<8xf32>
    %27 = vector.multi_reduction <add>, %26, %cst_13 [1] : vector<8x8xf32> to vector<8xf32>
    %28 = vector.shape_cast %27 : vector<8xf32> to vector<8x1xf32>
    %29 = vector.broadcast %28 : vector<8x1xf32> to vector<8x8xf32>
    %30 = arith.divf %26, %29 : vector<8x8xf32>
    %c0_14 = arith.constant 0 : index
    %c0_15 = arith.constant 0 : index
    %c0_16 = arith.constant 0 : index
    %c0_17 = arith.constant 0 : index
    %31 = vector.load %arg11[%c0_14, %c0_15, %c0_16, %c0_17] : memref<1x4x8x8xf32, #tpu.memory_space<vmem>>, vector<1x1x8x8xf32>
    %32 = vector.shape_cast %31 : vector<1x1x8x8xf32> to vector<8x8xf32>
    %33 = vector.shape_cast %30 : vector<8x8xf32> to vector<1x1x8x8xf32>
    tpu.vector_store %arg11[%c0_14, %c0_15, %c0_16, %c0_17], %33 {strides = array<i32>} : memref<1x4x8x8xf32, #tpu.memory_space<vmem>>, vector<1x1x8x8xf32>,
    %34 = arith.truncf %30 : vector<8x8xf32> to vector<8x8xbf16>
    %c0_18 = arith.constant 0 : index
    %c0_19 = arith.constant 0 : index
    %35 = vector.load %arg14[%c0_18, %c0_19] : memref<8x32xbf16, #tpu.memory_space<vmem>>, vector<8x8xbf16>
    %cst_20 = arith.constant dense<0.000000e+00> : vector<8x8xf32>
    %36 = tpu.matmul %34, %35, %cst_20 {dimension_numbers = #tpu.dot_dimension_numbers<[1], [0], [0], [1], [0, 0, 1, 1], [], []>} : vector<8x8xbf16>, vector<8x8xbf16>, vector<8x8xf32> -> vector<8x8xf32>
    %37 = vector.extract_strided_slice %14 {offsets = [0, 8], sizes = [8, 8], strides = [1, 1]} : vector<8x32xbf16> to vector<8x8xbf16>
    %c0_21 = arith.constant 0 : index
    %c8 = arith.constant 8 : index
    %38 = vector.load %arg13[%c0_21, %c8] : memref<8x32xbf16, #tpu.memory_space<vmem>>, vector<8x8xbf16>
    %cst_22 = arith.constant dense<0.000000e+00> : vector<8x8xf32>
    %39 = tpu.matmul %37, %38, %cst_22 {dimension_numbers = #tpu.dot_dimension_numbers<[1], [1], [0], [0], [0, 0, 1, 0], [], []>} : vector<8x8xbf16>, vector<8x8xbf16>, vector<8x8xf32> -> vector<8x8xf32>
    %40 = arith.addf %39, %17 : vector<8x8xf32>
    %cst_23 = arith.constant dense<0xFF800000> : vector<8xf32>
    %41 = vector.multi_reduction <maximumf>, %40, %cst_23 [1] : vector<8x8xf32> to vector<8xf32>
    %42 = vector.shape_cast %41 : vector<8xf32> to vector<8x1xf32>
    %43 = vector.broadcast %42 : vector<8x1xf32> to vector<8x8xf32>
    %44 = arith.subf %40, %43 : vector<8x8xf32>
    %45 = math.exp %44 : vector<8x8xf32>
    %cst_24 = arith.constant dense<0.000000e+00> : vector<8xf32>
    %46 = vector.multi_reduction <add>, %45, %cst_24 [1] : vector<8x8xf32> to vector<8xf32>
    %47 = vector.shape_cast %46 : vector<8xf32> to vector<8x1xf32>
    %48 = vector.broadcast %47 : vector<8x1xf32> to vector<8x8xf32>
    %49 = arith.divf %45, %48 : vector<8x8xf32>
    %c0_25 = arith.constant 0 : index
    %c1 = arith.constant 1 : index
    %c0_26 = arith.constant 0 : index
    %c0_27 = arith.constant 0 : index
    %50 = vector.load %arg11[%c0_25, %c1, %c0_26, %c0_27] : memref<1x4x8x8xf32, #tpu.memory_space<vmem>>, vector<1x1x8x8xf32>
    %51 = vector.shape_cast %50 : vector<1x1x8x8xf32> to vector<8x8xf32>
    %52 = vector.shape_cast %49 : vector<8x8xf32> to vector<1x1x8x8xf32>
    tpu.vector_store %arg11[%c0_25, %c1, %c0_26, %c0_27], %52 {strides = array<i32>} : memref<1x4x8x8xf32, #tpu.memory_space<vmem>>, vector<1x1x8x8xf32>,
    %53 = arith.truncf %49 : vector<8x8xf32> to vector<8x8xbf16>
    %c0_28 = arith.constant 0 : index
    %c8_29 = arith.constant 8 : index
    %54 = vector.load %arg14[%c0_28, %c8_29] : memref<8x32xbf16, #tpu.memory_space<vmem>>, vector<8x8xbf16>
    %cst_30 = arith.constant dense<0.000000e+00> : vector<8x8xf32>
    %55 = tpu.matmul %53, %54, %cst_30 {dimension_numbers = #tpu.dot_dimension_numbers<[1], [0], [0], [1], [0, 0, 1, 1], [], []>} : vector<8x8xbf16>, vector<8x8xbf16>, vector<8x8xf32> -> vector<8x8xf32>
    %56 = vector.extract_strided_slice %14 {offsets = [0, 16], sizes = [8, 8], strides = [1, 1]} : vector<8x32xbf16> to vector<8x8xbf16>
    %c0_31 = arith.constant 0 : index
    %c16 = arith.constant 16 : index
    %57 = vector.load %arg13[%c0_31, %c16] : memref<8x32xbf16, #tpu.memory_space<vmem>>, vector<8x8xbf16>
    %cst_32 = arith.constant dense<0.000000e+00> : vector<8x8xf32>
    %58 = tpu.matmul %56, %57, %cst_32 {dimension_numbers = #tpu.dot_dimension_numbers<[1], [1], [0], [0], [0, 0, 1, 0], [], []>} : vector<8x8xbf16>, vector<8x8xbf16>, vector<8x8xf32> -> vector<8x8xf32>
    %59 = arith.addf %58, %17 : vector<8x8xf32>
    %cst_33 = arith.constant dense<0xFF800000> : vector<8xf32>
    %60 = vector.multi_reduction <maximumf>, %59, %cst_33 [1] : vector<8x8xf32> to vector<8xf32>
    %61 = vector.shape_cast %60 : vector<8xf32> to vector<8x1xf32>
    %62 = vector.broadcast %61 : vector<8x1xf32> to vector<8x8xf32>
    %63 = arith.subf %59, %62 : vector<8x8xf32>
    %64 = math.exp %63 : vector<8x8xf32>
    %cst_34 = arith.constant dense<0.000000e+00> : vector<8xf32>
    %65 = vector.multi_reduction <add>, %64, %cst_34 [1] : vector<8x8xf32> to vector<8xf32>
    %66 = vector.shape_cast %65 : vector<8xf32> to vector<8x1xf32>
    %67 = vector.broadcast %66 : vector<8x1xf32> to vector<8x8xf32>
    %68 = arith.divf %64, %67 : vector<8x8xf32>
    %c0_35 = arith.constant 0 : index
    %c2 = arith.constant 2 : index
    %c0_36 = arith.constant 0 : index
    %c0_37 = arith.constant 0 : index
    %69 = vector.load %arg11[%c0_35, %c2, %c0_36, %c0_37] : memref<1x4x8x8xf32, #tpu.memory_space<vmem>>, vector<1x1x8x8xf32>
    %70 = vector.shape_cast %69 : vector<1x1x8x8xf32> to vector<8x8xf32>
    %71 = vector.shape_cast %68 : vector<8x8xf32> to vector<1x1x8x8xf32>
    tpu.vector_store %arg11[%c0_35, %c2, %c0_36, %c0_37], %71 {strides = array<i32>} : memref<1x4x8x8xf32, #tpu.memory_space<vmem>>, vector<1x1x8x8xf32>,
    %72 = arith.truncf %68 : vector<8x8xf32> to vector<8x8xbf16>
    %c0_38 = arith.constant 0 : index
    %c16_39 = arith.constant 16 : index
    %73 = vector.load %arg14[%c0_38, %c16_39] : memref<8x32xbf16, #tpu.memory_space<vmem>>, vector<8x8xbf16>
    %cst_40 = arith.constant dense<0.000000e+00> : vector<8x8xf32>
    %74 = tpu.matmul %72, %73, %cst_40 {dimension_numbers = #tpu.dot_dimension_numbers<[1], [0], [0], [1], [0, 0, 1, 1], [], []>} : vector<8x8xbf16>, vector<8x8xbf16>, vector<8x8xf32> -> vector<8x8xf32>
    %75 = vector.extract_strided_slice %14 {offsets = [0, 24], sizes = [8, 8], strides = [1, 1]} : vector<8x32xbf16> to vector<8x8xbf16>
    %c0_41 = arith.constant 0 : index
    %c24 = arith.constant 24 : index
    %76 = vector.load %arg13[%c0_41, %c24] : memref<8x32xbf16, #tpu.memory_space<vmem>>, vector<8x8xbf16>
    %cst_42 = arith.constant dense<0.000000e+00> : vector<8x8xf32>
    %77 = tpu.matmul %75, %76, %cst_42 {dimension_numbers = #tpu.dot_dimension_numbers<[1], [1], [0], [0], [0, 0, 1, 0], [], []>} : vector<8x8xbf16>, vector<8x8xbf16>, vector<8x8xf32> -> vector<8x8xf32>
    %78 = arith.addf %77, %17 : vector<8x8xf32>
    %cst_43 = arith.constant dense<0xFF800000> : vector<8xf32>
    %79 = vector.multi_reduction <maximumf>, %78, %cst_43 [1] : vector<8x8xf32> to vector<8xf32>
    %80 = vector.shape_cast %79 : vector<8xf32> to vector<8x1xf32>
    %81 = vector.broadcast %80 : vector<8x1xf32> to vector<8x8xf32>
    %82 = arith.subf %78, %81 : vector<8x8xf32>
    %83 = math.exp %82 : vector<8x8xf32>
    %cst_44 = arith.constant dense<0.000000e+00> : vector<8xf32>
    %84 = vector.multi_reduction <add>, %83, %cst_44 [1] : vector<8x8xf32> to vector<8xf32>
    %85 = vector.shape_cast %84 : vector<8xf32> to vector<8x1xf32>
    %86 = vector.broadcast %85 : vector<8x1xf32> to vector<8x8xf32>
    %87 = arith.divf %83, %86 : vector<8x8xf32>
    %c0_45 = arith.constant 0 : index
    %c3 = arith.constant 3 : index
    %c0_46 = arith.constant 0 : index
    %c0_47 = arith.constant 0 : index
    %88 = vector.load %arg11[%c0_45, %c3, %c0_46, %c0_47] : memref<1x4x8x8xf32, #tpu.memory_space<vmem>>, vector<1x1x8x8xf32>
    %89 = vector.shape_cast %88 : vector<1x1x8x8xf32> to vector<8x8xf32>
    %90 = vector.shape_cast %87 : vector<8x8xf32> to vector<1x1x8x8xf32>
    tpu.vector_store %arg11[%c0_45, %c3, %c0_46, %c0_47], %90 {strides = array<i32>} : memref<1x4x8x8xf32, #tpu.memory_space<vmem>>, vector<1x1x8x8xf32>,
    %91 = arith.truncf %87 : vector<8x8xf32> to vector<8x8xbf16>
    %c0_48 = arith.constant 0 : index
    %c24_49 = arith.constant 24 : index
    %92 = vector.load %arg14[%c0_48, %c24_49] : memref<8x32xbf16, #tpu.memory_space<vmem>>, vector<8x8xbf16>
    %cst_50 = arith.constant dense<0.000000e+00> : vector<8x8xf32>
    %93 = tpu.matmul %91, %92, %cst_50 {dimension_numbers = #tpu.dot_dimension_numbers<[1], [0], [0], [1], [0, 0, 1, 1], [], []>} : vector<8x8xbf16>, vector<8x8xbf16>, vector<8x8xf32> -> vector<8x8xf32>
    %94 = tpu.concatenate %36, %55, %74, %93 in 1 : vector<8x8xf32>, vector<8x8xf32>, vector<8x8xf32>, vector<8x8xf32> -> vector<8x32xf32>
    %95 = arith.truncf %94 : vector<8x32xf32> to vector<8x32xbf16>
    %c0_51 = arith.constant 0 : index
    %c0_52 = arith.constant 0 : index
    %c0_53 = arith.constant 0 : index
    %96 = vector.load %arg12[%c0_51, %c0_52, %c0_53] : memref<1x8x32xbf16, #tpu.memory_space<vmem>>, vector<1x8x32xbf16>
    %97 = vector.shape_cast %96 : vector<1x8x32xbf16> to vector<8x32xbf16>
    %98 = vector.shape_cast %95 : vector<8x32xbf16> to vector<1x8x32xbf16>
    tpu.vector_store %arg12[%c0_51, %c0_52, %c0_53], %98 {strides = array<i32>} : memref<1x8x32xbf16, #tpu.memory_space<vmem>>, vector<1x8x32xbf16>,
    return
  }
  func.func @transform_0(%arg0: i32, %arg1: i32, %arg2: i32) -> (i32, i32, i32) {
    %c0_i32 = arith.constant 0 : i32
    %c0_i32_0 = arith.constant 0 : i32
    %c0_i32_1 = arith.constant 0 : i32
    return %arg0, %c0_i32, %c0_i32_0 : i32, i32, i32
  }
  func.func @transform_1(%arg0: i32, %arg1: i32, %arg2: i32) -> (i32, i32, i32) {
    %c0_i32 = arith.constant 0 : i32
    %c0_i32_0 = arith.constant 0 : i32
    return %arg0, %arg2, %c0_i32 : i32, i32, i32
  }
  func.func @transform_2(%arg0: i32, %arg1: i32, %arg2: i32) -> (i32, i32) {
    %c0_i32 = arith.constant 0 : i32
    %c0_i32_0 = arith.constant 0 : i32
    return %c0_i32, %arg1 : i32, i32
  }
  func.func @transform_3(%arg0: i32, %arg1: i32, %arg2: i32) -> (i32, i32) {
    %c0_i32 = arith.constant 0 : i32
    %c0_i32_0 = arith.constant 0 : i32
    return %c0_i32, %arg1 : i32, i32
  }
  func.func @transform_4(%arg0: i32, %arg1: i32, %arg2: i32) -> (i32, i32) {
    %c0_i32 = arith.constant 0 : i32
    %c0_i32_0 = arith.constant 0 : i32
    return %c0_i32, %arg1 : i32, i32
  }
  func.func @transform_5(%arg0: i32, %arg1: i32, %arg2: i32) -> (i32, i32) {
    %c0_i32 = arith.constant 0 : i32
    %c0_i32_0 = arith.constant 0 : i32
    return %c0_i32, %arg1 : i32, i32
  }
  func.func @transform_6(%arg0: i32, %arg1: i32, %arg2: i32) -> (i32, i32) {
    %c0_i32 = arith.constant 0 : i32
    %c0_i32_0 = arith.constant 0 : i32
    return %c0_i32, %arg1 : i32, i32
  }
  func.func @transform_7(%arg0: i32, %arg1: i32, %arg2: i32) -> (i32, i32) {
    %c0_i32 = arith.constant 0 : i32
    %c0_i32_0 = arith.constant 0 : i32
    return %c0_i32, %arg1 : i32, i32
  }
  func.func @transform_8(%arg0: i32, %arg1: i32, %arg2: i32) -> (i32, i32, i32, i32) {
    %c0_i32 = arith.constant 0 : i32
    %c0_i32_0 = arith.constant 0 : i32
    return %arg0, %arg1, %arg2, %c0_i32 : i32, i32, i32, i32
  }
  func.func @transform_9(%arg0: i32, %arg1: i32, %arg2: i32) -> (i32, i32, i32) {
    %c0_i32 = arith.constant 0 : i32
    return %arg0, %arg2, %arg1 : i32, i32, i32
  }
}

</mosaic_0001>

<bundles_post_ra>
// kernel: tpu_custom_call.1
= control target key start
LH: loop header
LB: loop body
LE: loop exit
PB: predicated region body
PF: predicated region fallthrough
CT: control target
= control target key end

     0   :  { %s2461_s0 = inlined_call_operand.hbm [shape: f32[2,8,32], index: 0, kind: input, shape index: {}]   ;;  %s2462_s1 = inlined_call_operand.hbm [shape: bf16[2,8,8], index: 1, kind: input, shape index: {}]   ;;  %s2463_s2 = inlined_call_operand.hbm [shape: bf16[32,32], index: 2, kind: input, shape index: {}]   ;;  %s2464_s3 = inlined_call_operand.vmem [shape: f32[1,32], index: 3, kind: input, shape index: {}]   ;;  %s2465_s4 = inlined_call_operand.hbm [shape: bf16[32,32], index: 4, kind: input, shape index: {}]   ;;  %s2466_s5 = inlined_call_operand.vmem [shape: f32[1,32], index: 5, kind: input, shape index: {}]   ;;  %s2467_s6 = inlined_call_operand.hbm [shape: bf16[32,32], index: 6, kind: input, shape index: {}]   ;;  %s2468_s7 = inlined_call_operand.vmem [shape: f32[1,32], index: 7, kind: input, shape index: {}]   ;;  %s2469_s8 = inlined_call_operand.hbm [shape: f32[2,4,8,8], index: 8, kind: output, shape index: {0}]   ;;  %s2470_s9 = inlined_call_operand.hbm [shape: bf16[2,8,32], index: 9, kind: output, shape index: {1}]  }
   0x1   :  { %2478 = sst [smem:[#allocation27_spill]] %s2461_s0 }
   0x2   :  { %2479 = sst [smem:[#allocation28_spill]] %s2463_s2 }
   0x3   :  { %2480 = sst [smem:[#allocation29_spill]] %s2465_s4 }
   0x4   :  { %2481 = sst [smem:[#allocation30_spill]] %s2467_s6 }
   0x5   :  { %15 = vsyncpa [#allocation5], 0 }
   0x6   :  { %17 = vsyncpa [#allocation5 + $0x1], 0 }
   0x7   :  { %18 = vsyncpa [#allocation8], 0 }
   0x8   :  { %20 = vsyncpa [#allocation8 + $0x1], 0 }
   0x9   :  { %21 = vsyncpa [#allocation11], 0 }
   0xa   :  { %22 = vsyncpa [#allocation6], 0 }
   0xb   :  { %24 = vsyncpa [#allocation6 + $0x1], 0 }
   0xc   :  { %25 = vsyncpa [#allocation15], 0 }
   0xd   :  { %27 = vsyncpa [#allocation15 + $0x1], 0  ;;  %s2118_s30 = smov 0   ;;  %s2120_s10 = smov 0  }
   0xe   :  { %s2122_s11 = smov 0   ;;  %s2124_s12 = smov 0  }
   0xf   :  { %s2126_s13 = smov 0   ;;  %s2128_s14 = smov 0  }
  0x10 LB: > { %2482 = sst [smem:[#allocation22_spill]] %s2036_s11  ;;  %s2149_s15 = sadd.s32 4294967295, %s2048_s14   ;;  %s2048_s14 = sphi %s2128_s14, %s33_s14   ;;  %s2044_s13 = sphi %s2126_s13, %s2513_s13   ;;  %s2040_s12 = sphi %s2124_s12, %s2512_s12   ;;  %s2036_s11 = sphi %s2122_s11, %s2508_s11   ;;  %s2032_s10 = sphi %s2120_s10, %s2511_s10   ;;  %s2028_s30 = sphi %s2118_s30, %s2510_s30  }
  0x11   : > { %2483 = sst [smem:[#allocation23_spill]] %s2048_s14  ;;  %s1495_s16 = sadd.s32 4294967294, %s2048_s14  }
  0x12   : > { %p72_p0 = scmp.ne.s32.totalorder %s2032_s10, %s2028_s30  ;;  %p2471_p1 = scmp.eq.s32.totalorder %s2149_s15, 0 }
  0x13   : > { %p290_p3 = scmp.eq.s32.totalorder %s1495_s16, 1  ;;  %p1496_p5 = scmp.ge.s32.totalorder %s2048_s14, 1 }
  0x14   : > { %p2158_p4 = por %p2471_p1, %p72_p0  ;;  %p327_p7 = scmp.lt.s32.totalorder %s2048_s14, 3 }
  0x15   : > { %p2163_p6 = por %p290_p3, %p72_p0  ;;  %s2050_s20 = smov [#allocation9]  }
  0x16   : > { %s2484_s17 = scalar_select %p2158_p4, 1, 0 }
  0x17   : > { %s2485_s18 = scalar_select %p2163_p6, 1, 0 }
  0x18   : > { %p2168_p8 = pnand %p1496_p5, %p327_p7  ;;  %s341_s21 = sshll.u32 %s2050_s20, 4  ;;  %s342_s21 = int_to_ptr.vmem [resolvable:$true] %s341_s21 }
  0x19   : > { %2486 = sst [smem:[#allocation24_spill]] %s2485_s18  ;;  %s2051_s23 = smov [#allocation10]  }
  0x1a   : > { %p1670_p9 = pneg %p2168_p8  ;;  %s362_s24 = sshll.u32 %s2051_s23, 4  ;;  %s363_s24 = int_to_ptr.vmem [resolvable:$true] %s362_s24 }
  0x1b   : > { %s2052_s25 = smov [#allocation12]   ;;  %s1803_s27 = scalar_lea.vmem %s342_s21, 256 }
  0x1c   : > { %p2177_p11 = pnand %p1670_p9, %p2471_p1  ;;  %s383_s26 = sshll.u32 %s2052_s25, 4  ;;  %s384_s26 = int_to_ptr.vmem [resolvable:$true] %s383_s26 }
  0x1d   : > { %p1804_p13 = scmp.ne.s32.totalorder %s342_s21, %s1803_s27  ;;  %p1811_p5 = scmp.lt.s32.totalorder %s342_s21, %s342_s21 }
  0x1e   : > { %p1794_p12 = pneg %p2177_p11  ;;  %p1812_p7 = scmp.lt.s32.totalorder %s1803_s27, %s1803_s27 }
  0x20   : > { %p1806_p0 = pnand %p1804_p13, %p1794_p12  ;;  %p1813_p9 = por %p1812_p7, %p1811_p5 }
  0x22   : > { %p1807_p3 = pneg %p1806_p0 }
  0x24   : > { %p1814_p10 = pnand %p1813_p9, %p1807_p3 }
  0x26   : > { %1817 = shalt.err (!%p1814_p10)
}
  0x27   : > { %s2053_s28 = smov 64   ;;  %s2054_s29 = smov 4  }
  0x28   : > { %s2489_s2 = sld [smem:[#allocation28_spill]]  ;;  %s1829_s23 = scalar_lea.vmem %s363_s24, 256 }
  0x29   : > { %p1830_p1 = scmp.ne.s32.totalorder %s363_s24, %s1829_s23  ;;  %p1837_p2 = scmp.lt.s32.totalorder %s363_s24, %s363_s24 }
  0x2a   : > { %p1838_p6 = scmp.lt.s32.totalorder %s1829_s23, %s1829_s23 }
  0x2b   : > { %p1832_p13 = pnand %p1830_p1, %p1794_p12 }
  0x2c   : > { %p1839_p5 = por %p1838_p6, %p1837_p2 }
  0x2d   : > { %p1833_p0 = pneg %p1832_p13 }
  0x2e   : > { %1673 = dma.hbm_to_vmem [thread:$0]  (!%p2177_p11), %s2489_s2, 256, %s342_s21, [#allocation8], %s2053_s28, %s2053_s28, %s2054_s29  }
  0x2f   : > { %p1840_p3 = pnand %p1839_p5, %p1833_p0 }
  0x31   : > { %1843 = shalt.err (!%p1840_p3)
}
  0x32   : > { %s2490_s4 = sld [smem:[#allocation29_spill]]  ;;  %s1855_s21 = scalar_lea.vmem %s384_s26, 256 }
  0x33   : > { %p1856_p10 = scmp.ne.s32.totalorder %s384_s26, %s1855_s21  ;;  %p1863_p9 = scmp.lt.s32.totalorder %s384_s26, %s384_s26 }
  0x34   : > { %p1864_p13 = scmp.lt.s32.totalorder %s1855_s21, %s1855_s21 }
  0x35   : > { %p1858_p7 = pnand %p1856_p10, %p1794_p12 }
  0x36   : > { %p1865_p4 = por %p1864_p13, %p1863_p9 }
  0x37   : > { %p1859_p1 = pneg %p1858_p7 }
  0x38   : > { %1676 = dma.hbm_to_vmem [thread:$0]  (!%p2177_p11), %s2490_s4, 256, %s363_s24, [#allocation11], %s2053_s28, %s2053_s28, %s2054_s29  }
  0x39   : > { %p1866_p2 = pnand %p1865_p4, %p1859_p1 }
  0x3b   : > { %1869 = shalt.err (!%p1866_p2)
}
  0x3c   : > { %s2491_s6 = sld [smem:[#allocation30_spill]]  ;;  %s59_s24 = sadd.s32 1, %s2036_s11 }
  0x3d   : > { %s52_s23 = sadd.s32 1, %s2044_s13  ;;  %p66_p4 = scmp.ne.s32.totalorder %s2036_s11, %s2032_s10 }
  0x3e   : > { %p54_p6 = scmp.ge.s32.totalorder %s52_s23, 2  ;;  %p67_p12 = scmp.eq.s32.totalorder %s2048_s14, 0 }
  0x3f   : > { %p2492_p0 = scmp.eq.s32.totalorder %s2149_s15, 1  ;;  %p1697_p3 = scmp.lt.s32.totalorder %s2048_s14, 2 }
  0x40   : > { %s2515_s23 = smov (%p54_p6, %s52_s23), 0  ;;  %p68_p10 = por %p67_p12, %p66_p4 }
  0x41   : > { %p2214_p5 = por %p2492_p0, %p66_p4  ;;  %2494 = sst [smem:[#allocation25_spill]] %s2515_s23 }
  0x42   : > { %1679 = dma.hbm_to_vmem [thread:$0]  (!%p2177_p11), %s2491_s6, 256, %s384_s26, [#allocation11], %s2053_s28, %s2053_s28, %s2054_s29  }
  0x43   : > { %s2222_s25 = sand.u32 1, %s2036_s11   ;;  %s56_s26 = ssub.s32 %s2044_s13, %s2515_s23 }
  0x44   : > { %p57_p11 = scmp.eq.s32.totalorder %s56_s26, 0  ;;  %s1504_s28 = sshll.u32 %s2222_s25, 3 }
  0x45   : > { %s1505_s29 = sshll.u32 %s2044_s13, 7  ;;  %s2496_s0 = sld [smem:[#allocation27_spill]] }
  0x46   : > { %s2229_s27 = scalar_select %p57_p11, %s2036_s11, %s59_s24  }
  0x47   : > { %s407_s2 = scalar_lea.vmem [#allocation4], %s1504_s28  ;;  %p2236_p7 = pnand %p1697_p3, %p68_p10 }
  0x48   : > { %2495 = sst [smem:[#allocation26_spill]] %s2229_s27  ;;  %s414_s4 = sshll.u32 %s407_s2, 4  ;;  %s415_s4 = int_to_ptr.vmem [resolvable:$true] %s414_s4 }
  0x49   : > { %s421_s23 = sand.u32 1, %s2048_s14   ;;  %s1506_s26 = sshll.u32 %s2222_s25, 2 }
  0x4a   : > { %s404_s18 = scalar_lea.sflag [#allocation5], %s2222_s25  ;;  %p1872_p1 = pneg %p2236_p7 }
  0x4b   : > { %s412_s20 = scalar_lea.hbm %s2496_s0, %s1505_s29  ;;  %s1883_s24 = scalar_lea.vmem %s415_s4, 128 }
  0x4c   : > { %p1884_p9 = scmp.ne.s32.totalorder %s415_s4, %s1883_s24  ;;  %s2055_s2 = smov [#allocation4]  }
  0x4d   : > { %s1888_s28 = sshll.u32 %s2055_s2, 4  ;;  %s1889_s28 = int_to_ptr.vmem [resolvable:$false] %s1888_s28 }
  0x4e   : > { %p1886_p13 = pnand %p1884_p9, %p1872_p1  ;;  %s1890_s29 = scalar_lea.vmem %s1889_s28, 256 }
  0x4f   : > { %p1891_p4 = scmp.lt.s32.totalorder %s415_s4, %s1889_s28  ;;  %p1892_p6 = scmp.lt.s32.totalorder %s1890_s29, %s1883_s24 }
  0x50   : > { %p1887_p2 = pneg %p1886_p13 }
  0x51   : > { %p1893_p12 = por %p1892_p6, %p1891_p4 }
  0x53   : > { %p1894_p0 = pnand %p1893_p12, %p1887_p2 }
  0x55   : > { %1897 = shalt.err (!%p1894_p0)
}
  0x56   : > { %1683 = dma.hbm_to_vmem [thread:$0]  (!%p2236_p7), %s412_s20, 128, %s415_s4, %s404_s18  }
  0x57   : > { %s1507_s25 = sshll.u32 %s2044_s13, 6  ;;  %s425_s27 = scalar_lea.vmem [#allocation7], %s1506_s26 }
  0x58   : > { %s431_s0 = scalar_lea.hbm %s2462_s1, %s1507_s25  ;;  %s433_s11 = sshll.u32 %s425_s27, 4  ;;  %s434_s11 = int_to_ptr.vmem [resolvable:$true] %s433_s11 }
  0x59   : > { %s422_s2 = scalar_lea.sflag [#allocation8], %s421_s23  ;;  %s1911_s14 = scalar_lea.vmem %s434_s11, 64 }
  0x5a   : > { %p1912_p3 = scmp.ne.s32.totalorder %s434_s11, %s1911_s14  ;;  %s2056_s24 = smov [#allocation7]  }
  0x5b   : > { %s1916_s28 = sshll.u32 %s2056_s24, 4  ;;  %s1917_s28 = int_to_ptr.vmem [resolvable:$false] %s1916_s28 }
  0x5c   : > { %p1914_p10 = pnand %p1912_p3, %p1872_p1  ;;  %s1918_s29 = scalar_lea.vmem %s1917_s28, 128 }
  0x5d   : > { %p1919_p9 = scmp.lt.s32.totalorder %s434_s11, %s1917_s28  ;;  %p1920_p13 = scmp.lt.s32.totalorder %s1918_s29, %s1911_s14 }
  0x5e   : > { %p1915_p11 = pneg %p1914_p10 }
  0x5f   : > { %p1921_p2 = por %p1920_p13, %p1919_p9 }
  0x61   : > { %p1922_p4 = pnand %p1921_p2, %p1915_p11 }
  0x63   : > { %1925 = shalt.err (!%p1922_p4)
}
  0x64   : > { %1686 = dma.hbm_to_vmem [thread:$0]  (!%p2236_p7), %s431_s0, 64, %s434_s11, %s422_s2  }
  0x65   : > { %442 = sbr.rel (%p2168_p8) target bundleno = 1316 (0x524), region = 52  ;;  %s2262_s4 = sand.u32 (!%p2168_p8), 1, %s2032_s10  }
  0x66   : > { %s1509_s18 = sshll.u32 (!%p2168_p8), %s2262_s4, 3  ;;  %s445_s23 = scalar_lea.sflag (!%p2168_p8), [#allocation5], %s2262_s4 }
  0x67   : > { %s448_s27 = scalar_lea.vmem (!%p2168_p8), [#allocation4], %s1509_s18  ;;  %p2498_p1 = scmp.ne.s32.totalorder (!%p2168_p8), %s2484_s17, 0 }
  0x6a   : > { %2003 = dma.done.wait (%p2498_p1), %s445_s23, 128  }
  0x6b   : > { %2005 = vsyncadd (%p2498_p1), %s445_s23, 4294967168  ;;  %s453_s0 = sand.u32 1, %s2149_s15   ;;  %s1510_s6 = sshll.u32 %s2262_s4, 2 }
  0x6c   : > { %s454_s11 = scalar_lea.sflag [#allocation8], %s453_s0  ;;  %s2274_s14 = scalar_lea.vmem [#allocation7], %s1510_s6 }
  0x6d   : > { %2007 = dma.done.wait (%p2498_p1), %s454_s11, 64  }
  0x6e   : > { %2009 = vsyncadd (%p2498_p1), %s454_s11, 4294967232  ;;  %p2499_p8 = scmp.eq.s32.totalorder %s2149_s15, 0 }
  0x70   : > { %2011 = dma.done.wait (%p2499_p8), [#allocation8], 256   ;;  %p2500_p7 = pmov %p2499_p8 }
  0x72   : > { %2013 = vsyncadd (%p2500_p7), [#allocation8], 4294967040  ;;  %p2501_p6 = pmov %p2500_p7 }
  0x74   : > { %2015 = dma.done.wait (%p2501_p6), [#allocation11], 512   ;;  %p2502_p12 = pmov %p2501_p6 }
  0x75   : > { %v2057_v0 = vmov 0.0   ;;  %vm2058_vm0 = vmmov 0   ;;  %v1764_v1 = vld [vmem:[#allocation10 + $0x8] sm:$0xff]   ;;  %v1765_v2 = vld [vmem:[#allocation10] sm:$0xff]   ;;  %vm563_vm1 = vcmask 261120   ;;  %v1766_v5 = vld [vmem:[#allocation9 + $0x8] sm:$0xff]  }
  0x76   : > { %2017 = vsyncadd (%p2502_p12), [#allocation11], 4294966784  ;;  %1578 = vmatprep.subr.bf16.mxu0 %v2057_v0  ;;  %1582 = vmatprep.mubr.msk.bf16.mxu0 %vm2058_vm0, %v2057_v0  ;;  %v538_v3 = vld [vmem:[%s448_s27] sm:$0xff]  ;;  %v1767_v6 = vld [vmem:[#allocation9] sm:$0xff]   ;;  %vm671_vm2 = vcmask 257024   ;;  %vm750_vm3 = vcmask 64512  }
  0x77   : > { %1586 = vmatprep.subr.bf16.mxu1 %v2057_v0  ;;  %1590 = vmatprep.mubr.msk.bf16.mxu1 %vm2058_vm0, %v2057_v0  ;;  %v539_v4 = vpack.c.bf16 %v538_v3, %v538_v3  ;;  %v1768_v7 = vld [vmem:[#allocation12 + $0x8] sm:$0xff]   ;;  %v1769_v8 = vld [vmem:[#allocation12] sm:$0xff]   ;;  %s2059_s26 = smov 112   ;;  %s2060_s25 = smov 120   ;;  %vm814_vm4 = vcmask 1043456  }
  0x78   : > { %1579 = vmatpush3.bf16.msra.mxu0 %v1764_v1  ;;  %1587 = vmatpush3.bf16.msra.mxu1 %v1768_v7  ;;  %v1516_v9 = vld [vmem:[%s2466_s5] ss:$0 sm:$0xff]  ;;  %s2061_s21 = smov 104   ;;  %v747_v46 = vld [vmem:[%s2274_s14] sm:$0xf]  ;;  %s1514_s24 = sshll.u32 %s2262_s4, 5 }
  0x79   : > { %1580 = vmatprep.subr.bf16.mxu0 %v2057_v0  ;;  %1588 = vmatprep.subr.bf16.mxu1 %v2057_v0  ;;  %v1524_v16 = vld [vmem:[%s2464_s3] ss:$0 sm:$0xff]  ;;  %v748_v47 = vunpack.c.l.bf16 %v747_v46  ;;  %s2357_s28 = scalar_lea.vmem [#allocation13], %s1514_s24  ;;  %s2062_s29 = smov 8  }
  0x7a   : > { %v1520_v28 = vld [vmem:[%s2468_s7] ss:$0 sm:$0xff]  ;;  %s1552_s18 = sshll.u32 %s2040_s12, 9  ;;  %s1261_s11 = sshll.u32 %s2357_s28, 4  ;;  %s2391_s11 = int_to_ptr.vmem [resolvable:$true] %s1261_s11 }
  0x7b   : > { %s2388_s0 = scalar_lea.hbm %s2469_s8, %s1552_s18  ;;  %s1240_s14 = scalar_lea.sflag [#allocation6], %s2262_s4 }
  0x7c   : > { %1581 = vmatpush3.bf16.msra.mxu0 %v1765_v2  ;;  %1589 = vmatpush3.bf16.msra.mxu1 %v1769_v8  ;;  %s1926_s15 = scalar_lea.vmem %s2391_s11, 512  ;;  %s2063_s17 = smov [#allocation13]  }
  0x7d   : > { %1594 = vmatprep.subr.bf16.mxu0 %v2057_v0  ;;  %1602 = vmatprep.subr.bf16.mxu1 %v2057_v0  ;;  %p1927_p0 = scmp.ne.s32.totalorder %s2391_s11, %s1926_s15  ;;  %s1930_s19 = sshll.u32 %s2063_s17, 4  ;;  %s1931_s19 = int_to_ptr.vmem [resolvable:$false] %s1930_s19 }
  0x7e   : > { %s1932_s20 = scalar_lea.vmem %s1931_s19, 1024  ;;  %p1933_p11 = scmp.lt.s32.totalorder %s2391_s11, %s1931_s19 }
  0x7f   : > { %1583 = vmatmul.mubr.msk.bf16.vlgmr.msra.gmra.mxu0 %vm563_vm1, %v539_v4  ;;  %1591 = vmatmul.mubr.msk.bf16.vlgmr.msra.gmra.mxu1 %vm563_vm1, %v539_v4  ;;  %p1928_p3 = pnand %p1927_p0, %p2214_p5  ;;  %p1934_p9 = scmp.lt.s32.totalorder %s1932_s20, %s1926_s15 }
  0x80   : > { %1595 = vmatpush3.bf16.msra.mxu0 %v1766_v5  ;;  %1598 = vmatprep.mubr.msk.bf16.mxu0 %vm2058_vm0, %v2057_v0 }
  0x81   : > { %1596 = vmatprep.subr.bf16.mxu0 %v2057_v0  ;;  %1604 = vmatprep.mubr.msk.bf16.mxu1 %vm2058_vm0, %v2057_v0  ;;  %p1929_p10 = pneg %p1928_p3  ;;  %p1935_p13 = por %p1934_p9, %p1933_p11 }
  0x83   : > { %p1936_p2 = pnand %p1935_p13, %p1929_p10 }
  0x84   : > { %1597 = vmatpush3.bf16.msra.mxu0 %v1767_v6 }
  0x85   : > { %1608 = vmatprep.subr.bf16.mxu0 %v2057_v0 }
  0x87   : > { %1599 = vmatmul.mubr.msk.bf16.vlgmr.msra.gmra.mxu0 %vm563_vm1, %v539_v4 }
  0x88   : > { %1610 = vmatprep.mubr.msk.bf16.mxu0 %vm2058_vm0, %v2057_v0 }
 0x13f   : > { %v601_v10 = vpop.f32.mrf.mxu0  ;;  %v664_v29 = vpop.f32.mrf.mxu1 }
 0x140   : > { %v602_v11 = vadd.f32 %v1516_v9, %v601_v10  ;;  %v665_v30 = vadd.f32 %v1520_v28, %v664_v29 }
 0x141   : > { %v1584_v12 = vpop.f32.mrf.mxu0  ;;  %v1592_v31 = vpop.f32.mrf.mxu1 }
 0x142   : > { %v670_v13 = vpack.c.bf16 %v602_v11, %v602_v11  ;;  %v673_v32 = vpack.c.bf16 %v665_v30, %v665_v30 }
 0x143   : > { %v604_v14 = vpop.f32.mrf.mxu0  ;;  %v667_v33 = vpop.f32.mrf.mxu1 }
 0x144   : > { %672 = vst.msk [vmem:[#allocation2] sm:$0xf] %vm671_vm2, %v670_v13  ;;  %674 = vst.msk [vmem:[#allocation3] sm:$0xf] %vm671_vm2, %v673_v32 }
 0x145   : > { %v1585_v15 = vpop.f32.mrf.mxu0  ;;  %v1593_v34 = vpop.f32.mrf.mxu1 }
 0x147   : > { %v740_v17 = vpop.f32.mrf.mxu0 }
 0x148   : > { %v741_v18 = vadd.f32 %v1524_v16, %v740_v17 }
 0x149   : > { %v1600_v19 = vpop.f32.mrf.mxu0 }
 0x14a   : > { %v746_v25 = vpack.c.bf16 %v741_v18, %v741_v18 }
 0x14b   : > { %v749_v20 = vld [vmem:[#allocation2] sm:$0xf]  ;;  %v743_v22 = vpop.f32.mrf.mxu0  ;;  %v810_v35 = vld [vmem:[#allocation3] sm:$0xf] }
 0x14c   : > { %v1770_v21 = vld [vmem:[#allocation2] ss:$0 sps:$4 sm:$0xff]   ;;  %v755_v23 = vsel %vm750_vm3, %v749_v20, 0  ;;  %v816_v36 = vsel %vm814_vm4, %v810_v35, 0  ;;  %v1773_v14 = vld [vmem:[#allocation3] ss:$0 sps:$4 sm:$0xff]  }
 0x14d   : > { %v1771_v24 = vld [vmem:[#allocation2] ss:$0 sps:$4 sm:$0xff]   ;;  %1603 = vmatpush3.bf16.xpose.msra.mxu1 %v755_v23  ;;  %985 = vrot.lane.b32.xlu1 %v1770_v21, %s2059_s26  ;;  %v1601_v26 = vpop.f32.mrf.mxu0  ;;  %v1774_v31 = vld [vmem:[#allocation3] ss:$0 sps:$4 sm:$0xff]  }
 0x14e   : > { %865 = vrot.lane.b32.xlu0 %v1771_v24, %s2060_s25  ;;  %1614 = vmatprep.subr.bf16.mxu1 %v2057_v0  ;;  %v1772_v27 = vld [vmem:[#allocation2] ss:$0 sps:$4 sm:$0xff]   ;;  %v1775_v35 = vld [vmem:[#allocation3] ss:$0 sps:$4 sm:$0xff]  }
 0x14f   : > { %1609 = vmatpush3.bf16.msra.mxu0 %v816_v36 }
 0x150   : > { %1620 = vmatprep.subr.bf16.mxu0 %v2057_v0 }
 0x151   : > { %980 = vrot.lane.b32.xlu1 %v746_v25, %s2059_s26 }
 0x152   : > { %860 = vrot.lane.b32.xlu0 %v746_v25, %s2060_s25 }
 0x154   : > { %1605 = vmatmul.mubr.msk.bf16.vlgmr.msra.gmra.mxu1 %vm750_vm3, %v746_v25 }
 0x155   : > { %1100 = vrot.lane.b32.xlu1 %v746_v25, %s2061_s21  ;;  %1616 = vmatprep.mubr.msk.bf16.mxu1 %vm2058_vm0, %v2057_v0 }
 0x156   : > { %1105 = vrot.lane.b32.xlu0 %v1772_v27, %s2061_s21 }
 0x1bf   : > { %v986_v39 = vpop.permute.xlu1 %985 }
 0x1c0   : > { %v866_v37 = vpop.permute.xlu0 %865  ;;  %v991_v41 = vsel %vm750_vm3, %v986_v39, 0 }
 0x1c1   : > { %v871_v38 = vsel %vm750_vm3, %v866_v37, 0 }
 0x1c2   : > { %1615 = vmatpush3.bf16.xpose.msra.mxu1 %v871_v38 }
 0x1c3   : > { %1626 = vmatprep.subr.bf16.mxu1 %v2057_v0  ;;  %v981_v43 = vpop.permute.xlu1 %980 }
 0x1c4   : > { %v861_v40 = vpop.permute.xlu0 %860 }
 0x1c7   : > { %v1101_v45 = vpop.permute.xlu1 %1100 }
 0x1c8   : > { %v1106_v42 = vpop.permute.xlu0 %1105 }
 0x1c9   : > { %1617 = vmatmul.mubr.msk.bf16.vlgmr.msra.gmra.mxu1 %vm750_vm3, %v861_v40  ;;  %v1111_v44 = vsel %vm750_vm3, %v1106_v42, 0 }
 0x1ca   : > { %1627 = vmatpush3.bf16.xpose.msra.mxu1 %v991_v41  ;;  %1628 = vmatprep.mubr.msk.bf16.mxu1 %vm2058_vm0, %v2057_v0 }
 0x1cb   : > { %1638 = vmatprep.subr.bf16.mxu1 %v2057_v0 }
 0x1d1   : > { %1629 = vmatmul.mubr.msk.bf16.vlgmr.msra.gmra.mxu1 %vm750_vm3, %v981_v43 }
 0x1d2   : > { %1639 = vmatpush3.bf16.xpose.msra.mxu1 %v1111_v44  ;;  %1640 = vmatprep.mubr.msk.bf16.mxu1 %vm2058_vm0, %v2057_v0 }
 0x1d9   : > { %1641 = vmatmul.mubr.msk.bf16.vlgmr.msra.gmra.mxu1 %vm750_vm3, %v1101_v45 }
 0x214   : > { %v791_v48 = vpop.f32.mrf.mxu1 }
 0x215   : > { %v792_v49 = vadd.f32 %v791_v48, %v748_v47 }
 0x216   : > { %v1606_v50 = vpop.f32.mrf.mxu1 }
 0x217   : > { %v797_v51 = vsel %vm750_vm3, %v792_v49, -inf }
 0x218   : > { %798 = vmax.xlane.f32.xlu0 %v797_v51  ;;  %v794_v52 = vpop.f32.mrf.mxu1 }
 0x21a   : > { %v1607_v53 = vpop.f32.mrf.mxu1 }
 0x289   : > { %v907_v54 = vpop.f32.mrf.mxu1 }
 0x28a   : > { %v908_v55 = vadd.f32 %v907_v54, %v748_v47 }
 0x28b   : > { %v1618_v56 = vpop.f32.mrf.mxu1 }
 0x28c   : > { %v913_v57 = vsel %vm750_vm3, %v908_v55, -inf }
 0x28d   : > { %914 = vmax.xlane.f32.xlu1 %v913_v57  ;;  %v910_v58 = vpop.f32.mrf.mxu1 }
 0x28f   : > { %v1619_v59 = vpop.f32.mrf.mxu1 }
 0x291   : > { %v1027_v60 = vpop.f32.mrf.mxu1 }
 0x292   : > { %v1028_v61 = vadd.f32 %v1027_v60, %v748_v47 }
 0x293   : > { %v1630_v62 = vpop.f32.mrf.mxu1 }
 0x294   : > { %v1033_v63 = vsel %vm750_vm3, %v1028_v61, -inf }
 0x295   : > { %1034 = vmax.xlane.f32.xlu0 %v1033_v63  ;;  %v1030_v1 = vpop.f32.mrf.mxu1 }
 0x297   : > { %v1631_v2 = vpop.f32.mrf.mxu1 }
 0x299   : > { %v1147_v3 = vpop.f32.mrf.mxu1 }
 0x29a   : > { %v1148_v4 = vadd.f32 %v1147_v3, %v748_v47 }
 0x29b   : > { %v1642_v5 = vpop.f32.mrf.mxu1 }
 0x29c   : > { %v1153_v6 = vsel %vm750_vm3, %v1148_v4, -inf }
 0x29d   : > { %1154 = vmax.xlane.f32.xlu0 %v1153_v6  ;;  %v1150_v7 = vpop.f32.mrf.mxu1 }
 0x29f   : > { %v1643_v8 = vpop.f32.mrf.mxu1 }
 0x2a1   : > { %v799_v9 = vpop.xlane.xlu0 %798 }
 0x2a2   : > { %v800_v10 = vsub.f32 %v792_v49, %v799_v9 }
 0x2a4   : > { %v801_v11 = vmul.f32 1.442695, %v800_v10 }
 0x2a6   : > { %1776 = vpow2.f32 %v801_v11 }
 0x2b3   : > { %v1777_v12 = vpop.eup %1776 }
 0x2b4   : > { %v803_v13 = vsel %vm750_vm3, %v1777_v12, 0.0 }
 0x2b5   : > { %804 = vadd.xlane.f32.xlu1 %v803_v13 }
 0x2c6   : > { %931 = vrot.lane.b32.xlu1 %v1773_v14, %s2060_s25 }
 0x316   : > { %v915_v15 = vpop.xlane.xlu1 %914 }
 0x317   : > { %v916_v16 = vsub.f32 %v908_v55, %v915_v15 }
 0x319   : > { %v917_v17 = vmul.f32 1.442695, %v916_v16 }
 0x31b   : > { %1778 = vpow2.f32 %v917_v17 }
 0x31e   : > { %v1035_v18 = vpop.xlane.xlu0 %1034 }
 0x31f   : > { %v1036_v19 = vsub.f32 %v1028_v61, %v1035_v18 }
 0x321   : > { %v1037_v20 = vmul.f32 1.442695, %v1036_v19 }
 0x323   : > { %1780 = vpow2.f32 %v1037_v20 }
 0x326   : > { %v1155_v21 = vpop.xlane.xlu0 %1154 }
 0x327   : > { %v1156_v22 = vsub.f32 %v1148_v4, %v1155_v21 }
 0x328   : > { %v1779_v23 = vpop.eup %1778 }
 0x329   : > { %v1157_v24 = vmul.f32 1.442695, %v1156_v22  ;;  %v919_v25 = vsel %vm750_vm3, %v1779_v23, 0.0 }
 0x32a   : > { %920 = vadd.xlane.f32.xlu0 %v919_v25 }
 0x32b   : > { %1782 = vpow2.f32 %v1157_v24 }
 0x330   : > { %v1781_v26 = vpop.eup %1780 }
 0x331   : > { %v1039_v27 = vsel %vm750_vm3, %v1781_v26, 0.0 }
 0x332   : > { %1040 = vadd.xlane.f32.xlu1 %v1039_v27 }
 0x338   : > { %v1783_v28 = vpop.eup %1782 }
 0x339   : > { %v1159_v29 = vsel %vm750_vm3, %v1783_v28, 0.0 }
 0x33a   : > { %1160 = vadd.xlane.f32.xlu0 %v1159_v29 }
 0x33e   : > { %v805_v30 = vpop.xlane.xlu1 %804 }
 0x33f   : > { %1784 = vrcp.f32 %v805_v30 }
 0x342   : > { %v932_v34 = vpop.permute.xlu1 %931 }
 0x343   : > { %1171 = vrot.lane.b32.xlu1 %v1774_v31, %s2061_s21  ;;  %v937_v37 = vsel %vm814_vm4, %v932_v34, 0 }
 0x34c   : > { %v1785_v32 = vpop.eup %1784 }
 0x34d   : > { %v807_v33 = vmul.f32 %v1785_v32, %v1777_v12 }
 0x34f   : > { %808 = vst.msk [vmem:[%s2357_s28] sm:$0xff] %vm750_vm3, %v807_v33  ;;  %v809_v36 = vpack.c.bf16 %v807_v33, %v807_v33 }
 0x350   : > { %1051 = vrot.lane.b32.xlu0 %v1775_v35, %s2059_s26 }
 0x351   : > { %1611 = vmatmul.mubr.msk.bf16.vlgmr.msra.gmra.mxu0 %vm750_vm3, %v809_v36 }
 0x352   : > { %1621 = vmatpush3.bf16.msra.mxu0 %v937_v37  ;;  %1622 = vmatprep.mubr.msk.bf16.mxu0 %vm2058_vm0, %v2057_v0 }
 0x353   : > { %1632 = vmatprep.subr.bf16.mxu0 %v2057_v0 }
 0x3b3   : > { %v921_v38 = vpop.xlane.xlu0 %920 }
 0x3b4   : > { %1786 = vrcp.f32 %v921_v38 }
 0x3bb   : > { %v1041_v39 = vpop.xlane.xlu1 %1040 }
 0x3bc   : > { %1788 = vrcp.f32 %v1041_v39 }
 0x3bf   : > { %v1172_v48 = vpop.permute.xlu1 %1171 }
 0x3c0   : > { %v1177_v50 = vsel %vm814_vm4, %v1172_v48, 0 }
 0x3c1   : > { %v1787_v40 = vpop.eup %1786 }
 0x3c2   : > { %v923_v41 = vmul.f32 %v1787_v40, %v1779_v23 }
 0x3c3   : > { %v1161_v42 = vpop.xlane.xlu0 %1160 }
 0x3c4   : > { %1790 = vrcp.f32 %v1161_v42  ;;  %1532 = vst.msk [vmem:[%s2357_s28 + $0x8] sm:$0xff] %vm750_vm3, %v923_v41  ;;  %v926_v43 = vpack.c.bf16 %v923_v41, %v923_v41 }
 0x3c6   : > { %1623 = vmatmul.mubr.msk.bf16.vlgmr.msra.gmra.mxu0 %vm750_vm3, %v926_v43 }
 0x3c7   : > { %v1052_v44 = vpop.permute.xlu0 %1051  ;;  %1634 = vmatprep.mubr.msk.bf16.mxu0 %vm2058_vm0, %v2057_v0 }
 0x3c8   : > { %v1057_v45 = vsel %vm814_vm4, %v1052_v44, 0 }
 0x3c9   : > { %v1789_v46 = vpop.eup %1788  ;;  %1633 = vmatpush3.bf16.msra.mxu0 %v1057_v45 }
 0x3ca   : > { %1644 = vmatprep.subr.bf16.mxu0 %v2057_v0  ;;  %v1043_v47 = vmul.f32 %v1789_v46, %v1781_v26 }
 0x3cc   : > { %1537 = vst.msk [vmem:[%s2357_s28 + $0x10] sm:$0xff] %vm750_vm3, %v1043_v47  ;;  %v1046_v49 = vpack.c.bf16 %v1043_v47, %v1043_v47 }
 0x3ce   : > { %1635 = vmatmul.mubr.msk.bf16.vlgmr.msra.gmra.mxu0 %vm750_vm3, %v1046_v49 }
 0x3cf   : > { %1645 = vmatpush3.bf16.msra.mxu0 %v1177_v50  ;;  %1646 = vmatprep.mubr.msk.bf16.mxu0 %vm2058_vm0, %v2057_v0 }
 0x3d1   : > { %v1791_v51 = vpop.eup %1790 }
 0x3d2   : > { %v1163_v52 = vmul.f32 %v1791_v51, %v1783_v28 }
 0x3d4   : > { %1542 = vst.msk [vmem:[%s2357_s28 + $0x18] sm:$0xff] %vm750_vm3, %v1163_v52  ;;  %v1166_v53 = vpack.c.bf16 %v1163_v52, %v1163_v52 }
 0x3d6   : > { %1647 = vmatmul.mubr.msk.bf16.vlgmr.msra.gmra.mxu0 %vm750_vm3, %v1166_v53 }
 0x411   : > { %v852_v54 = vpop.f32.mrf.mxu0 }
 0x413   : > { %v1612_v55 = vpop.f32.mrf.mxu0 }
 0x415   : > { %v855_v56 = vpop.f32.mrf.mxu0 }
 0x417   : > { %v1613_v57 = vpop.f32.mrf.mxu0 }
 0x486   : > { %v973_v58 = vpop.f32.mrf.mxu0 }
 0x487   : > { %1220 = vrot.lane.b32.xlu1 %v973_v58, %s2062_s29 }
 0x488   : > { %v1624_v59 = vpop.f32.mrf.mxu0 }
 0x48a   : > { %v976_v0 = vpop.f32.mrf.mxu0 }
 0x48c   : > { %v1625_v60 = vpop.f32.mrf.mxu0 }
 0x48e   : > { %v1093_v61 = vpop.f32.mrf.mxu0 }
 0x48f   : > { %1939 = shalt.err (!%p1936_p2)
}
 0x490   : > { %s1940_s26 = scalar_lea.hbm %s2388_s0, 512  ;;  %s1944_s16 = scalar_lea.hbm %s2469_s8, 1024 }
 0x491   : > { %p1941_p4 = scmp.ne.s32.totalorder %s2388_s0, %s1940_s26  ;;  %p1945_p7 = scmp.lt.s32.totalorder %s2388_s0, %s2469_s8 }
 0x492   : > { %p1946_p6 = scmp.lt.s32.totalorder %s1944_s16, %s1940_s26 }
 0x493   : > { %p1942_p1 = pnand %p1941_p4, %p2214_p5 }
 0x494   : > { %p1947_p12 = por %p1946_p6, %p1945_p7 }
 0x495   : > { %p1943_p8 = pneg %p1942_p1 }
 0x497   : > { %p1948_p0 = pnand %p1947_p12, %p1943_p8 }
 0x499   : > { %1951 = shalt.err (!%p1948_p0)
}
 0x49a   : > { %s2064_s28 = smov 128   ;;  %s2065_s18 = smov 16   ;;  %v1636_v62 = vpop.f32.mrf.mxu0  ;;  %vm1232_vm5 = vcmask 130048   ;;  %vm1234_vm6 = vcmask 195584  }
 0x49b   : > { %1666 = dma.vmem_to_hbm [thread:$0]  (%p2214_p5), %s2391_s11, 512, %s2388_s0, %s1240_s14, %s2064_s28, %s2064_s28, %s2062_s29  }
 0x49c   : > { %1224 = vrot.lane.b32.xlu0 %v1093_v61, %s2065_s18  ;;  %v1096_v63 = vpop.f32.mrf.mxu0  ;;  %s2066_s23 = smov 24   ;;  %s1549_s29 = sshll.u32 %s2040_s12, 6 }
 0x49d   : > { %s522_s27 = scalar_lea.vmem [#allocation14], %s1510_s6  ;;  %s1277_s15 = scalar_lea.hbm %s2470_s9, %s1549_s29 }
 0x49e   : > { %v1637_v1 = vpop.f32.mrf.mxu0  ;;  %s1279_s0 = sshll.u32 %s522_s27, 4  ;;  %s1245_s17 = scalar_lea.sflag [#allocation15], %s2262_s4  ;;  %s1280_s0 = int_to_ptr.vmem [resolvable:$true] %s1279_s0 }
 0x49f   : > { %s1952_s19 = scalar_lea.vmem %s1280_s0, 64  ;;  %s2067_s12 = smov [#allocation14]  }
 0x4a0   : > { %v1213_v2 = vpop.f32.mrf.mxu0  ;;  %p1953_p3 = scmp.ne.s32.totalorder %s1280_s0, %s1952_s19  ;;  %s1956_s6 = sshll.u32 %s2067_s12, 4  ;;  %s1957_s6 = int_to_ptr.vmem [resolvable:$false] %s1956_s6 }
 0x4a1   : > { %1228 = vrot.lane.b32.xlu1 %v1213_v2, %s2066_s23  ;;  %s1958_s20 = scalar_lea.vmem %s1957_s6, 128  ;;  %p1959_p9 = scmp.lt.s32.totalorder %s1280_s0, %s1957_s6 }
 0x4a2   : > { %v1648_v3 = vpop.f32.mrf.mxu0  ;;  %p1954_p10 = pnand %p1953_p3, %p2214_p5  ;;  %p1960_p13 = scmp.lt.s32.totalorder %s1958_s20, %s1952_s19 }
 0x4a4   : > { %v1216_v4 = vpop.f32.mrf.mxu0  ;;  %p1955_p11 = pneg %p1954_p10  ;;  %p1961_p2 = por %p1960_p13, %p1959_p9 }
 0x4a6   : > { %v1649_v5 = vpop.f32.mrf.mxu0  ;;  %p1962_p4 = pnand %p1961_p2, %p1955_p11 }
 0x4f9   : > { %v1221_v6 = vpop.permute.xlu1 %1220 }
 0x4fa   : > { %v1231_v8 = vsel %vm750_vm3, %v852_v54, %v1221_v6 }
 0x50e   : > { %v1225_v7 = vpop.permute.xlu0 %1224 }
 0x50f   : > { %v1233_v9 = vsel %vm1232_vm5, %v1231_v8, %v1225_v7 }
 0x513   : > { %v1229_v10 = vpop.permute.xlu1 %1228 }
 0x514   : > { %v1235_v11 = vsel %vm1234_vm6, %v1233_v9, %v1229_v10 }
 0x515   : > { %v1236_v12 = vpack.c.bf16 %v1235_v11, %v1235_v11 }
 0x517   : > { %1238 = vst.msk [vmem:[%s522_s27] sm:$0xf] %vm671_vm2, %v1236_v12 }
 0x518   : > { %1965 = shalt.err (!%p1962_p4)
}
 0x519   : > { %s1966_s26 = scalar_lea.hbm %s1277_s15, 64  ;;  %s1970_s21 = scalar_lea.hbm %s2470_s9, 128 }
 0x51a   : > { %p1967_p1 = scmp.ne.s32.totalorder %s1277_s15, %s1966_s26  ;;  %p1971_p6 = scmp.lt.s32.totalorder %s1277_s15, %s2470_s9 }
 0x51b   : > { %p1972_p12 = scmp.lt.s32.totalorder %s1970_s21, %s1966_s26 }
 0x51c   : > { %p1968_p8 = pnand %p1967_p1, %p2214_p5 }
 0x51d   : > { %p1973_p0 = por %p1972_p12, %p1971_p6 }
 0x51e   : > { %p1969_p7 = pneg %p1968_p8 }
 0x520   : > { %p1974_p3 = pnand %p1973_p0, %p1969_p7 }
 0x522   : > { %1977 = shalt.err (!%p1974_p3)
}
 0x523   : > { %1667 = dma.vmem_to_hbm [thread:$0]  (%p2214_p5), %s1280_s0, 64, %s1277_s15, %s1245_s17  }
 0x524 PF: > { %s2503_s24 = sld [smem:[#allocation24_spill]]  ;;  %s1291_s18 = sand.u32 1, %s2028_s30  }
 0x525   : > { %s2504_s28 = sld [smem:[#allocation23_spill]]  ;;  %s1292_s23 = scalar_lea.sflag [#allocation6], %s1291_s18 }
 0x52a   : > { %p2505_p10 = scmp.ne.s32.totalorder %s2503_s24, 0 }
 0x52b   : > { %p2506_p11 = scmp.ge.s32.totalorder %s2504_s28, 2 }
 0x52d   : > { %p1688_p9 = pnand %p2506_p11, %p2505_p10 }
 0x52f   : > { %p1689_p13 = pneg %p1688_p9 }
 0x531   : > { %2019 = dma.done.wait (%p1689_p13), %s1292_s23, 512  }
 0x532   : > { %2021 = vsyncadd (%p1689_p13), %s1292_s23, 4294966784  ;;  %s1301_s29 = scalar_lea.sflag [#allocation15], %s1291_s18 }
 0x533   : > { %2023 = dma.done.wait (%p1689_p13), %s1301_s29, 64  }
 0x534   : > { %2025 = vsyncadd (%p1689_p13), %s1301_s29, 4294967232  ;;  %s33_s14 = sadd.s32 1, %s2504_s28   ;;  %s2507_s22 = sld [smem:[#allocation22_spill]] }
 0x535   : > { %p30_p2 = scmp.ge.s32.totalorder %s33_s14, 4   ;;  %s2508_s11 = sld [smem:[#allocation26_spill]] }
 0x536   : > { %s2509_s27 = sld [smem:[#allocation25_spill]]  ;;  %s2510_s30 = smov %s2032_s10 }
 0x537   : > { %s2512_s12 = smov %s2044_s13 }
 0x538   :  { %32 = sbr.rel (!%p30_p2) target bundleno = 16 (0x10), region = 159 }
 0x53a   : > { %s2511_s10 = smov %s2507_s22 }
 0x53c   : > { %s2513_s13 = smov %s2509_s27 }
 0x53d   :  { %1306 = vsyncpa [#allocation5], 1 }
 0x53e   :  { %1308 = vsyncpa [#allocation5 + $0x1], 1 }
 0x53f   :  { %1309 = vsyncpa [#allocation8], 1 }
 0x540   :  { %1311 = vsyncpa [#allocation8 + $0x1], 1 }
 0x541   :  { %1312 = vsyncpa [#allocation11], 1 }
 0x542   :  { %1313 = vsyncpa [#allocation6], 1 }
 0x543   :  { %1315 = vsyncpa [#allocation6 + $0x1], 1 }
 0x544   :  { %1316 = vsyncpa [#allocation15], 1 }
 0x545   :  { %1318 = vsyncpa [#allocation15 + $0x1], 1 }

</bundles_post_ra>
